<compile_context>
chip_gen: v7x
topology: tpu7x:2x2x1
jax: 0.10.0
libtpu: 0.0.40
codegen_flags: <defaults>
</compile_context>

<pallas_src>
import functools
import math

import jax
import jax.numpy as jnp
from jax import lax
from jax.experimental import pallas as pl
from jax.experimental.pallas import tpu as pltpu

_INV_SQRT2 = 1.0 / math.sqrt(2.0)
_SQRT_2_OVER_PI = math.sqrt(2.0 / math.pi)


def _phi_scalar(t):
    # Standard normal CDF evaluated in Python (trace-time constant).
    return 0.5 * (1.0 + math.erf(t * _INV_SQRT2))


def _phi_vec(x, approximate):
    if approximate:
        # tanh-form CDF approximation: transcendental goes to the EUP slot.
        return 0.5 * (1.0 + jnp.tanh(_SQRT_2_OVER_PI * (x + 0.044715 * x * x * x)))
    # Exact: matches the PyTorch Normal(0,1).cdf numerics.
    return 0.5 * (1.0 + lax.erf(x * _INV_SQRT2))


def _tgelu_math(x, *, tl, tr, c_r, c_l, approximate):
    """Elementwise TGeLU with a single Phi evaluation per element."""
    is_hi = x >= tr          # region 1
    is_lo = x < tl           # region 4
    is_neg = x < 0.0

    # Shift so only ONE Phi/erf is evaluated per element.
    shift = jnp.where(is_hi, tr, jnp.where(is_lo, tl, 0.0))
    xs = x - shift
    p = _phi_vec(xs, approximate)

    # Regions 1 & 3 use xs*(1-p); regions 2 & 4 use xs*p.
    # Under tl <= 0 <= tr this is exactly (x<0) XOR (x>=tr) XOR (x<tl).
    use_one_minus_p = is_neg ^ is_hi ^ is_lo
    q = jnp.where(use_one_minus_p, 1.0 - p, p)

    # Per-region additive constant (precomputed at trace time).
    const = jnp.where(is_hi, c_r, jnp.where(is_lo, c_l, 0.0))

    return (xs * q + const).astype(x.dtype)


def _tgelu_kernel(x_ref, o_ref, *, tl, tr, c_r, c_l, approximate):
    o_ref[...] = _tgelu_math(x_ref[...], tl=tl, tr=tr, c_r=c_r, c_l=c_l,
                             approximate=approximate)


def _tgelu_2d(x2d, *, tl, tr, c_r, c_l, block_rows, approximate, donate):
    """Run the Pallas kernel over a (rows, 128) lane-dense view."""
    rows, lanes = x2d.shape

    # Pick block rows so the grid has ~>=8 steps once the input is non-tiny
    # (keeps the double-buffered pipeline busy and lets the "parallel" axis
    # shard across TensorCores on v7x), capped at block_rows (4 MiB blocks).
    br = min(block_rows, pl.cdiv(rows, 8))
    br = max(8, (br // 8) * 8)     # multiple of 8 (f32 sublane tiling)
    br = min(br, rows)             # a block never exceeds the full extent
    grid = pl.cdiv(rows, br)       # partial trailing block is masked by Pallas

    kernel = functools.partial(_tgelu_kernel, tl=tl, tr=tr, c_r=c_r, c_l=c_l,
                               approximate=approximate)

    return pl.pallas_call(
        kernel,
        out_shape=jax.ShapeDtypeStruct((rows, lanes), x2d.dtype),
        grid_spec=pltpu.PrefetchScalarGridSpec(
            num_scalar_prefetch=0,
            grid=(grid,),
            in_specs=[pl.BlockSpec((br, lanes), lambda i: (i, 0))],
            out_specs=pl.BlockSpec((br, lanes), lambda i: (i, 0)),
        ),
        compiler_params=pltpu.CompilerParams(
            dimension_semantics=("parallel",),
            # 2 x (in + out) x 4 MiB = 16 MiB double-buffered; 32 MiB is within
            # scoped-VMEM limits on v5e/v6e/v7x with headroom.
            vmem_limit_bytes=32 * 1024 * 1024,
        ),
        input_output_aliases=({0: 0} if donate else {}),
    )(x2d)


def tgelu(x, tl, tr, *, block_rows=8192, approximate=False, donate_input=False):
    """Apply TGeLU elementwise to an arbitrarily shaped float array.

    approximate=False uses exact erf (matches PyTorch Normal.cdf numerics);
    approximate=True uses the tanh-form CDF (faster on v7x, small precision delta).
    donate_input=True aliases the input buffer to the output (caller must not
    reuse x afterwards).
    """
    tl_f, tr_f = float(tl), float(tr)
    if not (tl_f <= 0.0 <= tr_f):
        raise ValueError("TGeLU Pallas kernel requires tl <= 0 <= tr")

    c_r = tr_f * _phi_scalar(tr_f)            # tr * Phi(tr)
    c_l = tl_f * (1.0 - _phi_scalar(tl_f))    # tl * (1 - Phi(tl))
    kw = dict(tl=tl_f, tr=tr_f, c_r=c_r, c_l=c_l, approximate=approximate)

    orig_shape = x.shape
    total = x.size
    lanes = 128
    x_flat = jnp.ravel(x)

    rem = total % lanes
    bulk = total - rem

    if rem == 0:
        # Fast path: no pad, no slice, reshape is free for a contiguous array.
        out2d = _tgelu_2d(x_flat.reshape(total // lanes, lanes),
                          block_rows=block_rows, donate=donate_input, **kw)
        return out2d.reshape(orig_shape)

    # Ragged total: kernel over the 128-aligned bulk, tiny (<128 elem) pure-JAX
    # tail -- avoids padding + slice-copying the whole flat array.
    pieces = []
    if bulk:
        out_bulk = _tgelu_2d(x_flat[:bulk].reshape(bulk // lanes, lanes),
                             block_rows=block_rows, donate=False, **kw)
        pieces.append(out_bulk.reshape(-1))
    pieces.append(_tgelu_math(x_flat[bulk:], **kw))
    return jnp.concatenate(pieces).reshape(orig_shape)


def tgelu_ref(x, tl, tr):
    """Pure-JAX reference mirroring the PyTorch forward exactly."""
    def phi(v):
        return 0.5 * (1.0 + lax.erf(v * _INV_SQRT2))
    cond1 = (x >= tr).astype(x.dtype)
    cond2 = ((x >= 0.0) & (x < tr)).astype(x.dtype)
    cond3 = ((x >= tl) & (x < 0.0)).astype(x.dtype)
    cond4 = (x < tl).astype(x.dtype)
    term1 = tr * phi(jnp.asarray(tr, x.dtype)) + (x - tr) * (1.0 - phi(x - tr))
    term2 = x * phi(x)
    term3 = x * (1.0 - phi(x))
    term4 = tl * (1.0 - phi(jnp.asarray(tl, x.dtype))) + (x - tl) * phi(x - tl)
    return cond1 * term1 + cond2 * term2 + cond3 * term3 + cond4 * term4


if __name__ == "__main__":
    # Constructor args of TGeLU (deterministic, in-script).
    tl_val, tr_val = -2.0, 2.0

    key = jax.random.PRNGKey(0)
    # NCHW input, small shapes: batch=2, channels=4, spatial=16 (128-aligned total).
    x = jax.random.normal(key, (2, 4, 16, 16), dtype=jnp.float32) * 3.0

    y = tgelu(x, tl_val, tr_val)
    y = jax.block_until_ready(y)

    y_ref = tgelu_ref(x, tl_val, tr_val)
    assert y.shape == x.shape and y.dtype == x.dtype
    assert jnp.allclose(y, y_ref, atol=1e-5, rtol=1e-5), "mismatch vs reference"

    # Also exercise the ragged-total path (bulk kernel + tiny pure-JAX tail).
    x2 = jax.random.normal(jax.random.PRNGKey(1), (2, 3, 5, 11), dtype=jnp.float32) * 3.0
    y2 = jax.block_until_ready(tgelu(x2, tl_val, tr_val))
    assert jnp.allclose(y2, tgelu_ref(x2, tl_val, tr_val), atol=1e-5, rtol=1e-5), \
        "ragged-path mismatch vs reference"

    print("KERNEL_OK")
</pallas_src>

<mosaic_0001>
module attributes {stable_mosaic.version = 11 : i64} {
  func.func @_tgelu_kernel(%arg0: i32, %arg1: memref<8x128xf32, #tpu.memory_space<vmem>>, %arg2: memref<8x128xf32, #tpu.memory_space<vmem>>) attributes {dimension_semantics = [#tpu.dimension_semantics<parallel>], iteration_bounds = array<i64: 2>, scalar_prefetch = 0 : i64, scratch_operands = 0 : i64, tpu.core_type = #tpu.core_type<tc>, window_params = [{transform_indices = @transform_0, window_bounds = array<i64: 8, 128>}, {transform_indices = @transform_1, window_bounds = array<i64: 8, 128>}]} {
    %c0 = arith.constant 0 : index
    %c0_0 = arith.constant 0 : index
    %0 = vector.load %arg1[%c0, %c0_0] : memref<8x128xf32, #tpu.memory_space<vmem>>, vector<8x128xf32>
    %cst = arith.constant 2.000000e+00 : f32
    %1 = vector.broadcast %cst : f32 to vector<8x128xf32>
    %2 = arith.cmpf oge, %0, %1 : vector<8x128xf32>
    %cst_1 = arith.constant -2.000000e+00 : f32
    %3 = vector.broadcast %cst_1 : f32 to vector<8x128xf32>
    %4 = arith.cmpf olt, %0, %3 : vector<8x128xf32>
    %cst_2 = arith.constant 0.000000e+00 : f32
    %5 = vector.broadcast %cst_2 : f32 to vector<8x128xf32>
    %6 = arith.cmpf olt, %0, %5 : vector<8x128xf32>
    %cst_3 = arith.constant -2.000000e+00 : f32
    %cst_4 = arith.constant 0.000000e+00 : f32
    %7 = vector.broadcast %cst_3 : f32 to vector<8x128xf32>
    %8 = vector.broadcast %cst_4 : f32 to vector<8x128xf32>
    %9 = arith.select %4, %7, %8 : vector<8x128xi1>, vector<8x128xf32>
    %cst_5 = arith.constant 2.000000e+00 : f32
    %10 = vector.broadcast %cst_5 : f32 to vector<8x128xf32>
    %11 = arith.select %2, %10, %9 : vector<8x128xi1>, vector<8x128xf32>
    %12 = arith.subf %0, %11 : vector<8x128xf32>
    %cst_6 = arith.constant 0.707106769 : f32
    %13 = vector.broadcast %cst_6 : f32 to vector<8x128xf32>
    %14 = arith.mulf %12, %13 : vector<8x128xf32>
    %15 = math.erf %14 : vector<8x128xf32>
    %cst_7 = arith.constant 1.000000e+00 : f32
    %16 = vector.broadcast %cst_7 : f32 to vector<8x128xf32>
    %17 = arith.addf %16, %15 : vector<8x128xf32>
    %cst_8 = arith.constant 5.000000e-01 : f32
    %18 = vector.broadcast %cst_8 : f32 to vector<8x128xf32>
    %19 = arith.mulf %18, %17 : vector<8x128xf32>
    %20 = arith.xori %6, %2 : vector<8x128xi1>
    %21 = arith.xori %20, %4 : vector<8x128xi1>
    %cst_9 = arith.constant 1.000000e+00 : f32
    %22 = vector.broadcast %cst_9 : f32 to vector<8x128xf32>
    %23 = arith.subf %22, %19 : vector<8x128xf32>
    %24 = arith.select %21, %23, %19 : vector<8x128xi1>, vector<8x128xf32>
    %cst_10 = arith.constant -1.95449972 : f32
    %cst_11 = arith.constant 0.000000e+00 : f32
    %25 = vector.broadcast %cst_10 : f32 to vector<8x128xf32>
    %26 = vector.broadcast %cst_11 : f32 to vector<8x128xf32>
    %27 = arith.select %4, %25, %26 : vector<8x128xi1>, vector<8x128xf32>
    %cst_12 = arith.constant 1.95449972 : f32
    %28 = vector.broadcast %cst_12 : f32 to vector<8x128xf32>
    %29 = arith.select %2, %28, %27 : vector<8x128xi1>, vector<8x128xf32>
    %30 = arith.mulf %12, %24 : vector<8x128xf32>
    %31 = arith.addf %30, %29 : vector<8x128xf32>
    %c0_13 = arith.constant 0 : index
    %c0_14 = arith.constant 0 : index
    %32 = vector.load %arg2[%c0_13, %c0_14] : memref<8x128xf32, #tpu.memory_space<vmem>>, vector<8x128xf32>
    tpu.vector_store %arg2[%c0_13, %c0_14], %31 {strides = array<i32>} : memref<8x128xf32, #tpu.memory_space<vmem>>, vector<8x128xf32>,
    return
  }
  func.func @transform_0(%arg0: i32) -> (i32, i32) {
    %c0_i32 = arith.constant 0 : i32
    %c0_i32_0 = arith.constant 0 : i32
    return %arg0, %c0_i32 : i32, i32
  }
  func.func @transform_1(%arg0: i32) -> (i32, i32) {
    %c0_i32 = arith.constant 0 : i32
    %c0_i32_0 = arith.constant 0 : i32
    return %arg0, %c0_i32 : i32, i32
  }
}

</mosaic_0001>

<bundles_post_ra>
// kernel: tpu_custom_call.1
= control target key start
LH: loop header
LB: loop body
LE: loop exit
PB: predicated region body
PF: predicated region fallthrough
CT: control target
= control target key end

     0   :  { %6 = vsyncpa [#allocation3], 0  ;;  %s572_s0 = inlined_call_operand.hbm [shape: f32[16,128], index: 0, kind: input, shape index: {}]   ;;  %s573_s1 = inlined_call_operand.hbm [shape: f32[16,128], index: 1, kind: output, shape index: {}]  }
   0x1   :  { %8 = vsyncpa [#allocation3 + $0x1], 0 }
   0x2   :  { %9 = vsyncpa [#allocation4], 0 }
   0x3   :  { %11 = vsyncpa [#allocation4 + $0x1], 0  ;;  %s408_s6 = smov 0   ;;  %s410_s7 = smov 0  }
   0x4   :  { %s412_s8 = smov 0   ;;  %s414_s9 = smov 0  }
   0x5 LB: > { %s429_s10 = sadd.s32 4294967295, %s393_s9   ;;  %s236_s11 = sadd.s32 4294967294, %s393_s9   ;;  %s393_s9 = sphi %s414_s9, %s588_s9   ;;  %s389_s8 = sphi %s412_s8, %s587_s8   ;;  %s385_s7 = sphi %s410_s7, %s586_s7   ;;  %s381_s6 = sphi %s408_s6, %s585_s6  }
   0x6   : > { %s433_s12 = sadd.s32 1, %s393_s9   ;;  %s24_s13 = sadd.s32 1, %s389_s8 }
   0x7   : > { %s21_s14 = ssub.s32 %s393_s9, %s433_s12  ;;  %p31_p0 = scmp.ne.s32.totalorder %s389_s8, %s385_s7 }
   0x8   : > { %p22_p1 = scmp.eq.s32.totalorder %s21_s14, 0  ;;  %p32_p2 = scmp.eq.s32.totalorder %s393_s9, 0 }
   0x9   : > { %p37_p3 = scmp.ne.s32.totalorder %s385_s7, %s381_s6  ;;  %p38_p4 = scmp.eq.s32.totalorder %s429_s10, 0 }
   0xa   : > { %s445_s15 = scalar_select %p22_p1, %s389_s8, %s24_s13  }
   0xb   : > { %p447_p5 = por %p32_p2, %p31_p0  ;;  %p451_p6 = por %p38_p4, %p37_p3 }
   0xc   : > { %p61_p7 = scmp.eq.s32.totalorder %s429_s10, 1  ;;  %p67_p8 = scmp.eq.s32.totalorder %s236_s11, 1 }
   0xd   : > { %p260_p10 = scmp.lt.s32.totalorder %s393_s9, 2  ;;  %s87_s20 = sand.u32 1, %s389_s8  }
   0xe   : > { %p458_p11 = por %p61_p7, %p31_p0  ;;  %p462_p12 = por %p67_p8, %p37_p3 }
   0xf   : > { %s240_s21 = sshll.u32 %s393_s9, 7  ;;  %s239_s22 = sshll.u32 %s87_s20, 3 }
  0x10   : > { %s577_s18 = scalar_select %p458_p11, 1, 0 }
  0x11   : > { %s578_s19 = scalar_select %p462_p12, 1, 0 }
  0x12   : > { %s471_s25 = scalar_lea.hbm %s572_s0, %s240_s21  ;;  %s91_s26 = scalar_lea.vmem [#allocation2], %s239_s22 }
  0x13   : > { %s98_s27 = sshll.u32 %s91_s26, 4  ;;  %p475_p13 = pnand %p260_p10, %p447_p5  ;;  %s479_s27 = int_to_ptr.vmem [resolvable:$true] %s98_s27 }
  0x14   : > { %s88_s29 = scalar_lea.sflag [#allocation3], %s87_s20  ;;  %s297_s30 = scalar_lea.hbm %s471_s25, 128 }
  0x15   : > { %p298_p2 = scmp.ne.s32.totalorder %s471_s25, %s297_s30  ;;  %p299_p3 = pneg %p475_p13 }
  0x16   : > { %s302_s4 = scalar_lea.hbm %s572_s0, 256  ;;  %p303_p5 = scmp.lt.u32.totalorder %s471_s25, %s572_s0 }
  0x17   : > { %p300_p4 = pnand %p299_p3, %p298_p2  ;;  %p304_p8 = scmp.lt.u32.totalorder %s302_s4, %s297_s30 }
  0x18   : > { %p306_p9 = scmp.lt.u32.totalorder %s297_s30, %s471_s25 }
  0x19   : > { %p301_p7 = pneg %p300_p4  ;;  %p305_p10 = por %p304_p8, %p303_p5 }
  0x1b   : > { %p307_p0 = por %p306_p9, %p305_p10 }
  0x1d   : > { %p308_p1 = pnand %p307_p0, %p301_p7 }
  0x1f   : > { %311 = shalt.err (!%p308_p1)
}
  0x20   : > { %s312_s13 = scalar_lea.vmem %s479_s27, 128  ;;  %s395_s14 = smov [#allocation2]  }
  0x21   : > { %p313_p2 = scmp.ne.s32.totalorder %s479_s27, %s312_s13  ;;  %s317_s16 = sshll.u32 %s395_s14, 4  ;;  %s318_s16 = int_to_ptr.vmem [resolvable:$false] %s317_s16 }
  0x22   : > { %s319_s20 = scalar_lea.vmem %s318_s16, 256  ;;  %p320_p11 = scmp.lt.s32.totalorder %s479_s27, %s318_s16 }
  0x23   : > { %p315_p4 = pnand %p313_p2, %p299_p3  ;;  %p321_p5 = scmp.lt.s32.totalorder %s319_s20, %s312_s13 }
  0x25   : > { %p316_p12 = pneg %p315_p4  ;;  %p322_p8 = por %p321_p5, %p320_p11 }
  0x27   : > { %p323_p9 = pnand %p322_p8, %p316_p12 }
  0x29   : > { %326 = shalt.err (!%p323_p9)
}
  0x2a   : > { %255 = dma.hbm_to_vmem [thread:$0]  (!%p475_p13), %s471_s25, 128, %s479_s27, %s88_s29  }
  0x2b   : > { %p580_p0 = scmp.lt.s32.totalorder %s393_s9, 3  ;;  %p581_p1 = scmp.ge.s32.totalorder %s393_s9, 1 }
  0x2d   : > { %p104_p3 = pnand %p581_p1, %p580_p0 }
  0x2e   : > { %s513_s21 = sand.u32 (!%p104_p3), 1, %s385_s7  }
  0x2f   : > { %107 = sbr.rel (%p104_p3) target bundleno = 99 (0x63), region = 24  ;;  %s242_s22 = sshll.u32 (!%p104_p3), %s513_s21, 3 }
  0x30   : > { %s110_s23 = scalar_lea.sflag (!%p104_p3), [#allocation3], %s513_s21  ;;  %s113_s24 = scalar_lea.vmem (!%p104_p3), [#allocation2], %s242_s22 }
  0x36   : > { %372 = dma.done.wait (%p451_p6), %s110_s23, 128  }
  0x37   : > { %374 = vsyncadd (%p451_p6), %s110_s23, 4294967168  ;;  %v132_v0 = vld [vmem:[%s113_s24] sm:$0xff]  ;;  %v396_v1 = vmov 0.0   ;;  %s131_s17 = scalar_lea.vmem [#allocation5], %s242_s22  ;;  %s245_s26 = sshll.u32 %s429_s10, 7 }
  0x38   : > { %vm133_vm0 = vcmp.ge.f32.partialorder %v132_v0, 2.0  ;;  %vm134_vm1 = vcmp.lt.f32.partialorder %v132_v0, -2.0  ;;  %vm135_vm2 = vcmp.lt.f32.partialorder %v132_v0, 0.0  ;;  %s166_s25 = sshll.u32 %s131_s17, 4  ;;  %s530_s29 = scalar_lea.hbm %s573_s1, %s245_s26  ;;  %s525_s25 = int_to_ptr.vmem [resolvable:$true] %s166_s25 }
  0x39   : > { %v136_v2 = vsel %vm134_vm1, -2.0, %v396_v1  ;;  %vm143_vm3 = vmxor %vm135_vm2, %vm133_vm0  ;;  %v147_v9 = vsel %vm134_vm1, -1.9544997, %v396_v1  ;;  %s153_s30 = scalar_lea.sflag [#allocation4], %s513_s21  ;;  %s327_s2 = scalar_lea.vmem %s525_s25, 128 }
  0x3a   : > { %v137_v3 = vsel %vm133_vm0, 2.0, %v136_v2  ;;  %vm144_vm4 = vmxor %vm143_vm3, %vm134_vm1  ;;  %v148_v12 = vsel %vm133_vm0, 1.9544997, %v147_v9  ;;  %p328_p6 = scmp.ne.s32.totalorder %s525_s25, %s327_s2  ;;  %p582_p11 = scmp.ne.s32.totalorder %s577_s18, 0 }
  0x3b   : > { %v138_v4 = vsub.f32 %v132_v0, %v137_v3  ;;  %s397_s10 = smov [#allocation5]  }
  0x3c   : > { %p329_p12 = pnand %p328_p6, %p582_p11  ;;  %s331_s3 = sshll.u32 %s397_s10, 4  ;;  %s332_s3 = int_to_ptr.vmem [resolvable:$false] %s331_s3 }
  0x3d   : > { %v139_v5 = vmul.f32 0.70710677, %v138_v4  ;;  %s333_s4 = scalar_lea.vmem %s332_s3, 256  ;;  %p334_p7 = scmp.lt.s32.totalorder %s525_s25, %s332_s3 }
  0x3e   : > { %p330_p13 = pneg %p329_p12  ;;  %p335_p10 = scmp.lt.s32.totalorder %s333_s4, %s327_s2 }
  0x3f   : > { %295 = verf.f32 %v139_v5 }
  0x40   : > { %p336_p2 = por %p335_p10, %p334_p7 }
  0x42   : > { %p337_p4 = pnand %p336_p2, %p330_p13 }
  0x49   : > { %v296_v6 = vpop.eup %295 }
  0x4a   : > { %v141_v7 = vadd.f32 1.0, %v296_v6 }
  0x4c   : > { %v142_v8 = vmul.f32 0.5, %v141_v7 }
  0x4e   : > { %v145_v10 = vsub.f32 1.0, %v142_v8 }
  0x50   : > { %v146_v11 = vsel %vm144_vm4, %v145_v10, %v142_v8 }
  0x51   : > { %v149_v13 = vmul.f32 %v146_v11, %v138_v4 }
  0x53   : > { %v150_v14 = vadd.f32 %v149_v13, %v148_v12 }
  0x55   : > { %151 = vst [vmem:[%s131_s17] sm:$0xff] %v150_v14 }
  0x56   : > { %340 = shalt.err (!%p337_p4)
}
  0x57   : > { %s341_s5 = scalar_lea.hbm %s530_s29, 128  ;;  %s345_s14 = scalar_lea.hbm %s573_s1, 256 }
  0x58   : > { %p342_p5 = scmp.ne.s32.totalorder %s530_s29, %s341_s5  ;;  %p346_p0 = scmp.lt.u32.totalorder %s530_s29, %s573_s1 }
  0x59   : > { %p347_p1 = scmp.lt.u32.totalorder %s345_s14, %s341_s5  ;;  %p349_p6 = scmp.lt.u32.totalorder %s341_s5, %s530_s29 }
  0x5a   : > { %p343_p8 = pnand %p342_p5, %p582_p11 }
  0x5b   : > { %p348_p3 = por %p347_p1, %p346_p0 }
  0x5c   : > { %p344_p9 = pneg %p343_p8 }
  0x5d   : > { %p350_p12 = por %p349_p6, %p348_p3 }
  0x5f   : > { %p351_p13 = pnand %p350_p12, %p344_p9 }
  0x61   : > { %354 = shalt.err (!%p351_p13)
}
  0x62   : > { %250 = dma.vmem_to_hbm [thread:$0]  (%p582_p11), %s525_s25, 128, %s530_s29, %s153_s30  }
  0x63 PF: > { %s178_s21 = sand.u32 1, %s381_s6   ;;  %p583_p7 = scmp.ne.s32.totalorder %s578_s19, 0 }
  0x64   : > { %p584_p10 = scmp.ge.s32.totalorder %s393_s9, 2  ;;  %s179_s22 = scalar_lea.sflag [#allocation4], %s178_s21 }
  0x66   : > { %p257_p2 = pnand %p584_p10, %p583_p7 }
  0x68   : > { %376 = dma.done.wait (!%p257_p2), %s179_s22, 128  }
  0x69   : > { %378 = vsyncadd (!%p257_p2), %s179_s22, 4294967168  ;;  %p14_p4 = scmp.ge.s32.totalorder %s433_s12, 4   ;;  %s585_s6 = smov %s385_s7 }
  0x6a   : > { %s586_s7 = smov %s389_s8  ;;  %s587_s8 = smov %s445_s15 }
  0x6b   : > { %s588_s9 = smov %s433_s12  ;;  %16 = sbr.rel (!%p14_p4) target bundleno = 5 (0x5), region = 69 }
  0x72   :  { %184 = vsyncpa [#allocation3], 1 }
  0x73   :  { %186 = vsyncpa [#allocation3 + $0x1], 1 }
  0x74   :  { %187 = vsyncpa [#allocation4], 1 }
  0x75   :  { %189 = vsyncpa [#allocation4 + $0x1], 1 }

</bundles_post_ra>
